<compile_context>
chip_gen: v5e
topology: v5e:2x2
jax: 0.10.0
libtpu: 0.0.40
codegen_flags: <defaults>
</compile_context>

<pallas_src>
import jax
import jax.numpy as jnp
from jax import lax
from jax.experimental import pallas as pl
from jax.experimental.pallas import tpu as pltpu


NUM_JOINTS = 7
HIDDEN = 64
LANE = 128


def _round_up(x, m):
    return ((x + m - 1) // m) * m


def _mlp_kernel(x_ref,
                w1_ref, b1_ref, w2_ref, b2_ref, w3_ref, b3_ref,
                w4_ref, b4_ref, w5_ref, b5_ref, w6_ref, b6_ref,
                o_ref):
    """Full 6-layer MLP on one (tb, num_joints) batch tile.

    Activations are carried as (features, tb): hidden vregs are fully
    lane-packed and the final layer produces a lane-dense (1, tb) output block
    (no masked vst.msk stores).  Matmul operands are bf16 (native MXU path),
    accumulation / bias / ReLU in f32.
    """
    # (tb, nj) f32 -> (nj, tb) f32 via the XLU, then cast to bf16 for the MXU.
    # This in-kernel transpose of <=112 KB replaces the former wrapper-side
    # HBM transpose of the whole input.
    x_t = jnp.transpose(x_ref[...]).astype(jnp.bfloat16)        # (nj, tb) bf16

    def fc(h_bf16, w_ref, b_ref, relu):
        # W: (out, in) bf16, h: (in, tb) bf16 -> z: (out, tb) f32 accumulate.
        z = jnp.dot(w_ref[...], h_bf16, preferred_element_type=jnp.float32)
        z = z + b_ref[...]                       # (out, 1) f32 bias over lanes
        if relu:
            z = jnp.maximum(z, 0.0)              # f32 elementwise (v5e-safe)
        return z

    h = fc(x_t, w1_ref, b1_ref, True).astype(jnp.bfloat16)
    h = fc(h, w2_ref, b2_ref, True).astype(jnp.bfloat16)
    h = fc(h, w3_ref, b3_ref, True).astype(jnp.bfloat16)
    h = fc(h, w4_ref, b4_ref, True).astype(jnp.bfloat16)
    h = fc(h, w5_ref, b5_ref, True).astype(jnp.bfloat16)

    # Final layer: no activation.  (1, 64) @ (64, tb) -> (1, tb), lane-dense.
    z = fc(h, w6_ref, b6_ref, False)
    o_ref[...] = z.astype(o_ref.dtype)


def _tensorcores_per_chip():
    """2 on chips whose 'parallel' grid axes shard across TensorCores."""
    try:
        kind = jax.devices()[0].device_kind.lower()
    except Exception:
        return 1
    for tag in ("v7", "7x", "v5p", "v4", "v3"):
        if tag in kind:
            return 2
    return 1


def _choose_tiling(B, tile_b, num_cores):
    """Lane-aligned batch tile with tight padding; even step count on 2-TC chips."""
    b_pad = _round_up(B, LANE)
    tile_b = max(LANE, _round_up(tile_b, LANE))
    num_steps = pl.cdiv(b_pad, tile_b)
    if num_cores > 1:
        num_steps = _round_up(num_steps, num_cores)
    tb = _round_up(pl.cdiv(b_pad, num_steps), LANE)
    return tb, num_steps


def robot_collision_net(centers, params, *, tile_b=None):
    """centers: (B, num_joints) float32 -> (B, 1) float32 logits."""
    B, nj = centers.shape

    num_cores = _tensorcores_per_chip()
    if tile_b is None:
        # 1-TC chips (v5e/v6e): one big tile amortizes per-step overhead.
        # 2-TC chips (v7x): smaller tiles + even step count shard across cores.
        tile_b = 2048 if num_cores > 1 else 4096

    tb, num_steps = _choose_tiling(B, tile_b, num_cores)
    Bp = tb * num_steps

    # Natural (batch, joints) HBM layout: each (tb, nj) block is a single
    # contiguous DMA run -- no wrapper-side transpose.  Pad only the (cheap)
    # batch rows when needed; padded rows are garbage and sliced off after.
    x = centers
    if Bp != B:
        x = jnp.pad(x, ((0, Bp - B), (0, 0)))

    # Weights go in as bf16 for the MXU; biases stay f32 as (out, 1) columns
    # that broadcast over the lane (batch) axis.  All weights (~35 KB bf16)
    # stay fully VMEM-resident; constant index maps mean they're DMA'd once.
    flat_args = [x]
    in_specs = [pl.BlockSpec((tb, nj), lambda i: (i, 0))]
    for w, b in params:
        wb = w.astype(jnp.bfloat16)
        flat_args += [wb, b]
        in_specs += [pl.BlockSpec(wb.shape, lambda i: (0, 0)),
                     pl.BlockSpec(b.shape, lambda i: (0, 0))]

    n_w = sum(int(w.size) for w, _ in params)
    n_b = sum(int(b.size) for _, b in params)
    cost = pl.CostEstimate(
        flops=2 * Bp * n_w,                       # 2*B*(7*64 + 4*64*64 + 64)
        transcendentals=0,
        bytes_accessed=Bp * nj * 4 + Bp * 4 + n_w * 2 + n_b * 4,
    )

    out = pl.pallas_call(
        _mlp_kernel,
        out_shape=jax.ShapeDtypeStruct((1, Bp), jnp.float32),
        grid_spec=pltpu.PrefetchScalarGridSpec(
            num_scalar_prefetch=0,
            grid=(num_steps,),
            in_specs=in_specs,
            out_specs=pl.BlockSpec((1, tb), lambda i: (0, i)),
        ),
        compiler_params=pltpu.CompilerParams(
            dimension_semantics=("parallel",),
            vmem_limit_bytes=32 * 1024 * 1024,    # actual usage ~5 MB at tb=4096
        ),
        cost_estimate=cost,
    )(*flat_args)

    # (1, Bp) lane-dense output -> (B, 1) logits (padded columns dropped).
    return out[0, :B].reshape(B, 1)


def init_params(key, num_joints=NUM_JOINTS, hidden=HIDDEN):
    """Kaiming-uniform-ish init, weights in PyTorch (out, in) layout.

    Biases are stored as (out, 1) f32 columns so they broadcast over the lane
    (batch) axis inside the kernel.
    """
    dims = [(num_joints, hidden)] + [(hidden, hidden)] * 4 + [(hidden, 1)]
    params = []
    for (fin, fout) in dims:
        key, kw, kb = jax.random.split(key, 3)
        bound = 1.0 / jnp.sqrt(fin)
        w = jax.random.uniform(kw, (fout, fin), jnp.float32, -bound, bound)
        b = jax.random.uniform(kb, (fout, 1), jnp.float32, -bound, bound)
        params.append((w, b))
    return params


def reference_forward(centers, params):
    """Pure-JAX f32 reference of the PyTorch forward pass (x @ W.T + b)."""
    h = centers
    for i, (w, b) in enumerate(params):
        h = h @ w.T + b.reshape(1, -1)
        if i < len(params) - 1:
            h = jnp.maximum(h, 0.0)
    return h


if __name__ == "__main__":
    key = jax.random.PRNGKey(0)
    kp, kx, kx2 = jax.random.split(key, 3)

    params = init_params(kp)

    # Small but representative batch; tile_b=256 -> a 2-step "parallel" grid.
    B = 512
    centers = jax.random.uniform(kx, (B, NUM_JOINTS), jnp.float32, -3.14, 3.14)
    out = jax.block_until_ready(robot_collision_net(centers, params, tile_b=256))
    ref = reference_forward(centers, params)
    assert out.shape == (B, 1), out.shape
    # bf16 matmul operands with f32 accumulation -> loosened tolerance.
    assert jnp.allclose(out, ref, atol=5e-2, rtol=5e-2), float(
        jnp.max(jnp.abs(out - ref)))

    # Non-lane-multiple batch exercises the (tight) wrapper-side padding path.
    B2 = 300
    centers2 = jax.random.uniform(kx2, (B2, NUM_JOINTS), jnp.float32, -3.14, 3.14)
    out2 = jax.block_until_ready(robot_collision_net(centers2, params))
    ref2 = reference_forward(centers2, params)
    assert out2.shape == (B2, 1), out2.shape
    assert jnp.allclose(out2, ref2, atol=5e-2, rtol=5e-2), float(
        jnp.max(jnp.abs(out2 - ref2)))

    print("KERNEL_OK")
</pallas_src>

<mosaic_0001>
module attributes {stable_mosaic.version = 11 : i64} {
  func.func @_mlp_kernel(%arg0: i32, %arg1: memref<256x7xf32, #tpu.memory_space<vmem>>, %arg2: memref<64x7xbf16, #tpu.memory_space<vmem>>, %arg3: memref<64x1xf32, #tpu.memory_space<vmem>>, %arg4: memref<64x64xbf16, #tpu.memory_space<vmem>>, %arg5: memref<64x1xf32, #tpu.memory_space<vmem>>, %arg6: memref<64x64xbf16, #tpu.memory_space<vmem>>, %arg7: memref<64x1xf32, #tpu.memory_space<vmem>>, %arg8: memref<64x64xbf16, #tpu.memory_space<vmem>>, %arg9: memref<64x1xf32, #tpu.memory_space<vmem>>, %arg10: memref<64x64xbf16, #tpu.memory_space<vmem>>, %arg11: memref<64x1xf32, #tpu.memory_space<vmem>>, %arg12: memref<1x64xbf16, #tpu.memory_space<vmem>>, %arg13: memref<1x1xf32, #tpu.memory_space<vmem>>, %arg14: memref<1x256xf32, #tpu.memory_space<vmem>>) attributes {dimension_semantics = [#tpu.dimension_semantics<parallel>], iteration_bounds = array<i64: 2>, scalar_prefetch = 0 : i64, scratch_operands = 0 : i64, tpu.core_type = #tpu.core_type<tc>, window_params = [{transform_indices = @transform_0, window_bounds = array<i64: 256, 7>}, {pipeline_mode = #tpu.pipeline_mode<synchronous>, transform_indices = @transform_1, window_bounds = array<i64: 64, 7>}, {pipeline_mode = #tpu.pipeline_mode<synchronous>, transform_indices = @transform_2, window_bounds = array<i64: 64, 1>}, {pipeline_mode = #tpu.pipeline_mode<synchronous>, transform_indices = @transform_3, window_bounds = array<i64: 64, 64>}, {pipeline_mode = #tpu.pipeline_mode<synchronous>, transform_indices = @transform_4, window_bounds = array<i64: 64, 1>}, {pipeline_mode = #tpu.pipeline_mode<synchronous>, transform_indices = @transform_5, window_bounds = array<i64: 64, 64>}, {pipeline_mode = #tpu.pipeline_mode<synchronous>, transform_indices = @transform_6, window_bounds = array<i64: 64, 1>}, {pipeline_mode = #tpu.pipeline_mode<synchronous>, transform_indices = @transform_7, window_bounds = array<i64: 64, 64>}, {pipeline_mode = #tpu.pipeline_mode<synchronous>, transform_indices = @transform_8, window_bounds = array<i64: 64, 1>}, {pipeline_mode = #tpu.pipeline_mode<synchronous>, transform_indices = @transform_9, window_bounds = array<i64: 64, 64>}, {pipeline_mode = #tpu.pipeline_mode<synchronous>, transform_indices = @transform_10, window_bounds = array<i64: 64, 1>}, {pipeline_mode = #tpu.pipeline_mode<synchronous>, transform_indices = @transform_11, window_bounds = array<i64: 1, 64>}, {pipeline_mode = #tpu.pipeline_mode<synchronous>, transform_indices = @transform_12, window_bounds = array<i64: 1, 1>}, {transform_indices = @transform_13, window_bounds = array<i64: 1, 256>}]} {
    %c0 = arith.constant 0 : index
    %c0_0 = arith.constant 0 : index
    %0 = vector.load %arg1[%c0, %c0_0] : memref<256x7xf32, #tpu.memory_space<vmem>>, vector<256x7xf32>
    %1 = tpu.transpose %0, [1, 0] : vector<256x7xf32> -> vector<7x256xf32>
    %2 = arith.truncf %1 : vector<7x256xf32> to vector<7x256xbf16>
    %c0_1 = arith.constant 0 : index
    %c0_2 = arith.constant 0 : index
    %3 = vector.load %arg2[%c0_1, %c0_2] : memref<64x7xbf16, #tpu.memory_space<vmem>>, vector<64x7xbf16>
    %cst = arith.constant dense<0.000000e+00> : vector<64x256xf32>
    %4 = tpu.matmul %3, %2, %cst {dimension_numbers = #tpu.dot_dimension_numbers<[1], [0], [0], [1], [0, 0, 1, 1], [], []>} : vector<64x7xbf16>, vector<7x256xbf16>, vector<64x256xf32> -> vector<64x256xf32>
    %c0_3 = arith.constant 0 : index
    %c0_4 = arith.constant 0 : index
    %5 = vector.load %arg3[%c0_3, %c0_4] : memref<64x1xf32, #tpu.memory_space<vmem>>, vector<64x1xf32>
    %6 = vector.broadcast %5 : vector<64x1xf32> to vector<64x256xf32>
    %7 = arith.addf %4, %6 : vector<64x256xf32>
    %cst_5 = arith.constant 0.000000e+00 : f32
    %8 = vector.broadcast %cst_5 : f32 to vector<64x256xf32>
    %9 = arith.maximumf %7, %8 : vector<64x256xf32>
    %10 = arith.truncf %9 : vector<64x256xf32> to vector<64x256xbf16>
    %c0_6 = arith.constant 0 : index
    %c0_7 = arith.constant 0 : index
    %11 = vector.load %arg4[%c0_6, %c0_7] : memref<64x64xbf16, #tpu.memory_space<vmem>>, vector<64x64xbf16>
    %cst_8 = arith.constant dense<0.000000e+00> : vector<64x256xf32>
    %12 = tpu.matmul %11, %10, %cst_8 {dimension_numbers = #tpu.dot_dimension_numbers<[1], [0], [0], [1], [0, 0, 1, 1], [], []>} : vector<64x64xbf16>, vector<64x256xbf16>, vector<64x256xf32> -> vector<64x256xf32>
    %c0_9 = arith.constant 0 : index
    %c0_10 = arith.constant 0 : index
    %13 = vector.load %arg5[%c0_9, %c0_10] : memref<64x1xf32, #tpu.memory_space<vmem>>, vector<64x1xf32>
    %14 = vector.broadcast %13 : vector<64x1xf32> to vector<64x256xf32>
    %15 = arith.addf %12, %14 : vector<64x256xf32>
    %cst_11 = arith.constant 0.000000e+00 : f32
    %16 = vector.broadcast %cst_11 : f32 to vector<64x256xf32>
    %17 = arith.maximumf %15, %16 : vector<64x256xf32>
    %18 = arith.truncf %17 : vector<64x256xf32> to vector<64x256xbf16>
    %c0_12 = arith.constant 0 : index
    %c0_13 = arith.constant 0 : index
    %19 = vector.load %arg6[%c0_12, %c0_13] : memref<64x64xbf16, #tpu.memory_space<vmem>>, vector<64x64xbf16>
    %cst_14 = arith.constant dense<0.000000e+00> : vector<64x256xf32>
    %20 = tpu.matmul %19, %18, %cst_14 {dimension_numbers = #tpu.dot_dimension_numbers<[1], [0], [0], [1], [0, 0, 1, 1], [], []>} : vector<64x64xbf16>, vector<64x256xbf16>, vector<64x256xf32> -> vector<64x256xf32>
    %c0_15 = arith.constant 0 : index
    %c0_16 = arith.constant 0 : index
    %21 = vector.load %arg7[%c0_15, %c0_16] : memref<64x1xf32, #tpu.memory_space<vmem>>, vector<64x1xf32>
    %22 = vector.broadcast %21 : vector<64x1xf32> to vector<64x256xf32>
    %23 = arith.addf %20, %22 : vector<64x256xf32>
    %cst_17 = arith.constant 0.000000e+00 : f32
    %24 = vector.broadcast %cst_17 : f32 to vector<64x256xf32>
    %25 = arith.maximumf %23, %24 : vector<64x256xf32>
    %26 = arith.truncf %25 : vector<64x256xf32> to vector<64x256xbf16>
    %c0_18 = arith.constant 0 : index
    %c0_19 = arith.constant 0 : index
    %27 = vector.load %arg8[%c0_18, %c0_19] : memref<64x64xbf16, #tpu.memory_space<vmem>>, vector<64x64xbf16>
    %cst_20 = arith.constant dense<0.000000e+00> : vector<64x256xf32>
    %28 = tpu.matmul %27, %26, %cst_20 {dimension_numbers = #tpu.dot_dimension_numbers<[1], [0], [0], [1], [0, 0, 1, 1], [], []>} : vector<64x64xbf16>, vector<64x256xbf16>, vector<64x256xf32> -> vector<64x256xf32>
    %c0_21 = arith.constant 0 : index
    %c0_22 = arith.constant 0 : index
    %29 = vector.load %arg9[%c0_21, %c0_22] : memref<64x1xf32, #tpu.memory_space<vmem>>, vector<64x1xf32>
    %30 = vector.broadcast %29 : vector<64x1xf32> to vector<64x256xf32>
    %31 = arith.addf %28, %30 : vector<64x256xf32>
    %cst_23 = arith.constant 0.000000e+00 : f32
    %32 = vector.broadcast %cst_23 : f32 to vector<64x256xf32>
    %33 = arith.maximumf %31, %32 : vector<64x256xf32>
    %34 = arith.truncf %33 : vector<64x256xf32> to vector<64x256xbf16>
    %c0_24 = arith.constant 0 : index
    %c0_25 = arith.constant 0 : index
    %35 = vector.load %arg10[%c0_24, %c0_25] : memref<64x64xbf16, #tpu.memory_space<vmem>>, vector<64x64xbf16>
    %cst_26 = arith.constant dense<0.000000e+00> : vector<64x256xf32>
    %36 = tpu.matmul %35, %34, %cst_26 {dimension_numbers = #tpu.dot_dimension_numbers<[1], [0], [0], [1], [0, 0, 1, 1], [], []>} : vector<64x64xbf16>, vector<64x256xbf16>, vector<64x256xf32> -> vector<64x256xf32>
    %c0_27 = arith.constant 0 : index
    %c0_28 = arith.constant 0 : index
    %37 = vector.load %arg11[%c0_27, %c0_28] : memref<64x1xf32, #tpu.memory_space<vmem>>, vector<64x1xf32>
    %38 = vector.broadcast %37 : vector<64x1xf32> to vector<64x256xf32>
    %39 = arith.addf %36, %38 : vector<64x256xf32>
    %cst_29 = arith.constant 0.000000e+00 : f32
    %40 = vector.broadcast %cst_29 : f32 to vector<64x256xf32>
    %41 = arith.maximumf %39, %40 : vector<64x256xf32>
    %42 = arith.truncf %41 : vector<64x256xf32> to vector<64x256xbf16>
    %c0_30 = arith.constant 0 : index
    %c0_31 = arith.constant 0 : index
    %43 = vector.load %arg12[%c0_30, %c0_31] : memref<1x64xbf16, #tpu.memory_space<vmem>>, vector<1x64xbf16>
    %cst_32 = arith.constant dense<0.000000e+00> : vector<1x256xf32>
    %44 = tpu.matmul %43, %42, %cst_32 {dimension_numbers = #tpu.dot_dimension_numbers<[1], [0], [0], [1], [0, 0, 1, 1], [], []>} : vector<1x64xbf16>, vector<64x256xbf16>, vector<1x256xf32> -> vector<1x256xf32>
    %c0_33 = arith.constant 0 : index
    %c0_34 = arith.constant 0 : index
    %45 = vector.load %arg13[%c0_33, %c0_34] : memref<1x1xf32, #tpu.memory_space<vmem>>, vector<1x1xf32>
    %46 = vector.broadcast %45 : vector<1x1xf32> to vector<1x256xf32>
    %47 = arith.addf %44, %46 : vector<1x256xf32>
    %c0_35 = arith.constant 0 : index
    %c0_36 = arith.constant 0 : index
    %48 = vector.load %arg14[%c0_35, %c0_36] : memref<1x256xf32, #tpu.memory_space<vmem>>, vector<1x256xf32>
    tpu.vector_store %arg14[%c0_35, %c0_36], %47 {strides = array<i32>} : memref<1x256xf32, #tpu.memory_space<vmem>>, vector<1x256xf32>,
    return
  }
  func.func @transform_0(%arg0: i32) -> (i32, i32) {
    %c0_i32 = arith.constant 0 : i32
    %c0_i32_0 = arith.constant 0 : i32
    return %arg0, %c0_i32 : i32, i32
  }
  func.func @transform_1(%arg0: i32) -> (i32, i32) {
    %c0_i32 = arith.constant 0 : i32
    %c0_i32_0 = arith.constant 0 : i32
    %c0_i32_1 = arith.constant 0 : i32
    return %c0_i32, %c0_i32_0 : i32, i32
  }
  func.func @transform_2(%arg0: i32) -> (i32, i32) {
    %c0_i32 = arith.constant 0 : i32
    %c0_i32_0 = arith.constant 0 : i32
    %c0_i32_1 = arith.constant 0 : i32
    return %c0_i32, %c0_i32_0 : i32, i32
  }
  func.func @transform_3(%arg0: i32) -> (i32, i32) {
    %c0_i32 = arith.constant 0 : i32
    %c0_i32_0 = arith.constant 0 : i32
    %c0_i32_1 = arith.constant 0 : i32
    return %c0_i32, %c0_i32_0 : i32, i32
  }
  func.func @transform_4(%arg0: i32) -> (i32, i32) {
    %c0_i32 = arith.constant 0 : i32
    %c0_i32_0 = arith.constant 0 : i32
    %c0_i32_1 = arith.constant 0 : i32
    return %c0_i32, %c0_i32_0 : i32, i32
  }
  func.func @transform_5(%arg0: i32) -> (i32, i32) {
    %c0_i32 = arith.constant 0 : i32
    %c0_i32_0 = arith.constant 0 : i32
    %c0_i32_1 = arith.constant 0 : i32
    return %c0_i32, %c0_i32_0 : i32, i32
  }
  func.func @transform_6(%arg0: i32) -> (i32, i32) {
    %c0_i32 = arith.constant 0 : i32
    %c0_i32_0 = arith.constant 0 : i32
    %c0_i32_1 = arith.constant 0 : i32
    return %c0_i32, %c0_i32_0 : i32, i32
  }
  func.func @transform_7(%arg0: i32) -> (i32, i32) {
    %c0_i32 = arith.constant 0 : i32
    %c0_i32_0 = arith.constant 0 : i32
    %c0_i32_1 = arith.constant 0 : i32
    return %c0_i32, %c0_i32_0 : i32, i32
  }
  func.func @transform_8(%arg0: i32) -> (i32, i32) {
    %c0_i32 = arith.constant 0 : i32
    %c0_i32_0 = arith.constant 0 : i32
    %c0_i32_1 = arith.constant 0 : i32
    return %c0_i32, %c0_i32_0 : i32, i32
  }
  func.func @transform_9(%arg0: i32) -> (i32, i32) {
    %c0_i32 = arith.constant 0 : i32
    %c0_i32_0 = arith.constant 0 : i32
    %c0_i32_1 = arith.constant 0 : i32
    return %c0_i32, %c0_i32_0 : i32, i32
  }
  func.func @transform_10(%arg0: i32) -> (i32, i32) {
    %c0_i32 = arith.constant 0 : i32
    %c0_i32_0 = arith.constant 0 : i32
    %c0_i32_1 = arith.constant 0 : i32
    return %c0_i32, %c0_i32_0 : i32, i32
  }
  func.func @transform_11(%arg0: i32) -> (i32, i32) {
    %c0_i32 = arith.constant 0 : i32
    %c0_i32_0 = arith.constant 0 : i32
    %c0_i32_1 = arith.constant 0 : i32
    return %c0_i32, %c0_i32_0 : i32, i32
  }
  func.func @transform_12(%arg0: i32) -> (i32, i32) {
    %c0_i32 = arith.constant 0 : i32
    %c0_i32_0 = arith.constant 0 : i32
    %c0_i32_1 = arith.constant 0 : i32
    return %c0_i32, %c0_i32_0 : i32, i32
  }
  func.func @transform_13(%arg0: i32) -> (i32, i32) {
    %c0_i32 = arith.constant 0 : i32
    %c0_i32_0 = arith.constant 0 : i32
    return %c0_i32, %arg0 : i32, i32
  }
}

</mosaic_0001>

<bundles_post_ra>
// kernel: tpu_custom_call.1
= control target key start
LH: loop header
LB: loop body
LE: loop exit
PB: predicated region body
PF: predicated region fallthrough
CT: control target
= control target key end

     0   :  { %s2249_s0 = inlined_call_operand.vmem [shape: f32[512,7], index: 0, kind: input, shape index: {}]   ;;  %s2250_s1 = inlined_call_operand.vmem [shape: bf16[64,7], index: 1, kind: input, shape index: {}]   ;;  %s2251_s2 = inlined_call_operand.vmem [shape: f32[64,1], index: 2, kind: input, shape index: {}]   ;;  %s2252_s3 = inlined_call_operand.vmem [shape: bf16[64,64], index: 3, kind: input, shape index: {}]   ;;  %s2253_s4 = inlined_call_operand.vmem [shape: f32[64,1], index: 4, kind: input, shape index: {}]   ;;  %s2254_s5 = inlined_call_operand.vmem [shape: bf16[64,64], index: 5, kind: input, shape index: {}]   ;;  %s2255_s6 = inlined_call_operand.vmem [shape: f32[64,1], index: 6, kind: input, shape index: {}]   ;;  %s2256_s7 = inlined_call_operand.vmem [shape: bf16[64,64], index: 7, kind: input, shape index: {}]   ;;  %s2257_s8 = inlined_call_operand.vmem [shape: f32[64,1], index: 8, kind: input, shape index: {}]   ;;  %s2258_s9 = inlined_call_operand.vmem [shape: bf16[64,64], index: 9, kind: input, shape index: {}]   ;;  %s2259_s10 = inlined_call_operand.vmem [shape: f32[64,1], index: 10, kind: input, shape index: {}]   ;;  %s2260_s11 = inlined_call_operand.vmem [shape: bf16[1,64], index: 11, kind: input, shape index: {}]   ;;  %s2261_s12 = inlined_call_operand.<no memory space> [shape: f32[1,1], index: 12, kind: input, shape index: {}]   ;;  %s2262_s13 = inlined_call_operand.hbm [shape: f32[1,512], index: 13, kind: output, shape index: {}]  }
   0x1   :  { %2263 = sst [smem:[#allocation6_spill]] %s2249_s0  ;;  %v18_v0 = vstv %s2261_s12 }
   0x2   :  { %2264 = sst [smem:[#allocation7_spill]] %s2250_s1  ;;  %19 = vst [vmem:[#allocation2] sm:$0x1] %v18_v0 }
   0x3   :  { %20 = vsyncpa [#allocation4], 0 }
   0x4   :  { %22 = vsyncpa [#allocation4 + $0x1], 0  ;;  %s1903_s27 = smov 0   ;;  %s1905_s28 = smov 0  }
   0x5   :  { %s1907_s29 = smov 0   ;;  %s1909_s30 = smov 0  }
   0x6 LB: > { %s1924_s12 = sadd.s32 4294967295, %s1826_s30   ;;  %s1528_s14 = sadd.s32 4294967294, %s1826_s30   ;;  %s1826_s30 = sphi %s1909_s30, %s2272_s30   ;;  %s1822_s29 = sphi %s1907_s29, %s2271_s29   ;;  %s1818_s28 = sphi %s1905_s28, %s2270_s28   ;;  %s1814_s27 = sphi %s1903_s27, %s2269_s27  }
   0x7   : > { %s1928_s15 = sadd.s32 1, %s1826_s30   ;;  %s313_s16 = sadd.s32 1, %s1822_s29 }
   0x8   : > { %s310_s17 = ssub.s32 %s1826_s30, %s1928_s15  ;;  %p323_p0 = scmp.ne.s32.totalorder %s1822_s29, %s1818_s28 }
   0x9   : > { %p311_p1 = scmp.eq.s32.totalorder %s310_s17, 0  ;;  %p324_p2 = scmp.eq.s32.totalorder %s1924_s12, 1 }
   0xa   : > { %p329_p3 = scmp.ne.s32.totalorder %s1818_s28, %s1814_s27  ;;  %p330_p4 = scmp.eq.s32.totalorder %s1528_s14, 1 }
   0xb   : > { %s1939_s18 = scalar_select %p311_p1, %s1822_s29, %s313_s16  }
   0xc   : > { %p1941_p5 = por %p324_p2, %p323_p0  ;;  %p1945_p6 = por %p330_p4, %p329_p3 }
   0xd   : > { %p1531_p7 = scmp.ge.s32.totalorder %s1826_s30, 1  ;;  %p393_p8 = scmp.lt.s32.totalorder %s1826_s30, 3 }
   0xf   : > { %p394_p9 = pnand %p1531_p7, %p393_p8 }
  0x10   : > { %s1533_s21 = sshll.u32 (!%p394_p9), %s1924_s12, 5  ;;  %s2267_s0 = sld [smem:[#allocation6_spill]] (!%p394_p9) }
  0x11   : > { %397 = sbr.rel (%p394_p9) target bundleno = 1352 (0x548), region = 72  ;;  %p438_p10 = scmp.lt.s32.totalorder (!%p394_p9), %s1533_s21, 63 }
  0x12   : > { %s2268_s1 = sld [smem:[#allocation7_spill]] (!%p394_p9)  ;;  %s434_s17 = sand.u32 (!%p394_p9), 1, %s1818_s28  }
  0x13   : > { %s1784_s23 = scalar_lea.hbm (!%p394_p9), %s2262_s13, 4 }
  0x16   : > { %s2274_s21 = smov (!%p438_p10, %s1533_s21), 63  ;;  %v1828_v12 = vmov 0   ;;  %v557_v14 = vld [vmem:[%s2251_s2 + $0x30] sm:$0xff]  ;;  %v558_v18 = vld [vmem:[%s2251_s2 + $0x38] sm:$0xff]  ;;  %v555_v26 = vld [vmem:[%s2251_s2 + $0x20] sm:$0xff]  ;;  %vm632_vm0 = vcmask 1042432  }
  0x17   : > { %s1534_s22 = sshll.u32 %s2274_s21, 3  ;;  %1761 = vset.pattern.permute.xlu1 %v1828_v12  ;;  %1762 = vset.pattern.permute.xlu2 %v1828_v12  ;;  %v553_v22 = vld [vmem:[%s2251_s2 + $0x10] sm:$0xff]  ;;  %v551_v27 = vld [vmem:[%s2251_s2] sm:$0xff]  ;;  %v556_v31 = vld [vmem:[%s2251_s2 + $0x28] sm:$0xff]  ;;  %vm633_vm1 = vcmask 1043456   ;;  %vm619_vm2 = vcmask 56320  }
  0x18   : > { %s1955_s25 = scalar_lea.vmem %s2267_s0, %s1534_s22  ;;  %591 = vperm.xlu1 %1761, %v557_v14   ;;  %581 = vperm.xlu2 %1762, %v555_v26   ;;  %v738_v32 = vld [vmem:[%s2253_s4 + $0x30] sm:$0xff]  ;;  %v554_v36 = vld [vmem:[%s2251_s2 + $0x18] sm:$0xff]  ;;  %v736_v37 = vld [vmem:[%s2253_s4 + $0x20] sm:$0xff]  ;;  %vm800_vm3 = vcmask 523264   ;;  %s1532_s21 = sshll.u32 %s434_s17, 1  ;;  %vm1445_vm4 = vcmask 1040384  }
  0x19   : > { %v445_v1 = vld [vmem:[%s1955_s25] sm:$0xff]  ;;  %v446_v4 = vld [vmem:[%s1955_s25 + $0x8] sm:$0xff]  ;;  %v447_v7 = vld [vmem:[%s1955_s25 + $0x10] sm:$0xff]  ;;  %s1658_s0 = sshll.u32 %s1924_s12, 1  ;;  %s436_s26 = scalar_lea.vmem [#allocation3], %s1532_s21 }
  0x1a   : > { %v461_v2 = vld [vmem:[%s1955_s25 + $0x80] sm:$0xff]  ;;  %v462_v5 = vld [vmem:[%s1955_s25 + $0x88] sm:$0xff]  ;;  %v463_v8 = vld [vmem:[%s1955_s25 + $0x90] sm:$0xff]  ;;  %s1464_s24 = scalar_lea.hbm %s2262_s13, %s1658_s0  ;;  %s1454_s12 = scalar_lea.sflag [#allocation4], %s434_s17 }
  0x1b   : > { %v1724_v3 = vpack.i.bf16 %v461_v2, %v445_v1  ;;  %v1726_v6 = vpack.i.bf16 %v462_v5, %v446_v4  ;;  %v1728_v9 = vpack.i.bf16 %v463_v8, %v447_v7  ;;  %v448_v10 = vld [vmem:[%s1955_s25 + $0x18] sm:$0xff]  ;;  %v449_v15 = vld [vmem:[%s1955_s25 + $0x20] sm:$0xff]  ;;  %v450_v19 = vld [vmem:[%s1955_s25 + $0x28] sm:$0xff]  ;;  %s1468_s14 = sshll.u32 %s1464_s24, 4  ;;  %s1469_s14 = int_to_ptr.hbm [resolvable:$true] %s1468_s14 }
  0x1c   : > { %v464_v11 = vld [vmem:[%s1955_s25 + $0x98] sm:$0xff]  ;;  %v465_v16 = vld [vmem:[%s1955_s25 + $0xa0] sm:$0xff]  ;;  %v466_v20 = vld [vmem:[%s1955_s25 + $0xa8] sm:$0xff]  ;;  %s1778_s16 = sshra.s32 %s1469_s14, 4  ;;  %s1779_s16 = int_to_ptr.hbm [resolvable:$true] %s1778_s16 }
  0x1d   : > { %1725 = vxpose.xlu0.b32.start [1/16] (narrow) %v1724_v3, 8  ;;  %v1730_v13 = vpack.i.bf16 %v464_v11, %v448_v10  ;;  %v1732_v17 = vpack.i.bf16 %v465_v16, %v449_v15  ;;  %v1734_v21 = vpack.i.bf16 %v466_v20, %v450_v19  ;;  %v451_v23 = vld [vmem:[%s1955_s25 + $0x30] sm:$0xff]  ;;  %v452_v28 = vld [vmem:[%s1955_s25 + $0x38] sm:$0xff]  ;;  %v453_v33 = vld [vmem:[%s1955_s25 + $0x40] sm:$0xff]  ;;  %v1829_v20 = vmov 65535   ;;  %s1780_s0 = scalar_lea.hbm %s1779_s16, 2  ;;  %p1785_p0 = scmp.lt.s32.totalorder %s1779_s16, %s2262_s13 }
  0x1e   : > { %v467_v24 = vld [vmem:[%s1955_s25 + $0xb0] sm:$0xff]  ;;  %v468_v29 = vld [vmem:[%s1955_s25 + $0xb8] sm:$0xff]  ;;  %v469_v34 = vld [vmem:[%s1955_s25 + $0xc0] sm:$0xff]  ;;  %p1781_p11 = scmp.ne.s32.totalorder %s1779_s16, %s1780_s0  ;;  %p1786_p1 = scmp.lt.s32.totalorder %s1784_s23, %s1780_s0 }
  0x1f   : > { %v1736_v25 = vpack.i.bf16 %v467_v24, %v451_v23  ;;  %v1738_v30 = vpack.i.bf16 %v468_v29, %v452_v28  ;;  %v1740_v35 = vpack.i.bf16 %v469_v34, %v453_v33  ;;  %v454_v38 = vld [vmem:[%s1955_s25 + $0x48] sm:$0xff]  ;;  %v734_v42 = vld [vmem:[%s2253_s4 + $0x10] sm:$0xff]  ;;  %v739_v46 = vld [vmem:[%s2253_s4 + $0x38] sm:$0xff] }
  0x20   : > { %596 = vperm.xlu1 %1761, %v558_v18   ;;  %586 = vperm.xlu2 %1762, %v556_v31   ;;  %v470_v39 = vld [vmem:[%s1955_s25 + $0xc8] sm:$0xff]  ;;  %v455_v43 = vld [vmem:[%s1955_s25 + $0x50] sm:$0xff]  ;;  %v732_v47 = vld [vmem:[%s2253_s4] sm:$0xff]  ;;  %p1782_p12 = pnand %p1781_p11, %p1941_p5  ;;  %p1787_p2 = por %p1786_p1, %p1785_p0 }
  0x21   : > { %v1742_v40 = vpack.i.bf16 %v470_v39, %v454_v38  ;;  %v552_v41 = vld [vmem:[%s2251_s2 + $0x8] sm:$0xff]  ;;  %v471_v44 = vld [vmem:[%s1955_s25 + $0xd0] sm:$0xff]  ;;  %v456_v48 = vld [vmem:[%s1955_s25 + $0x58] sm:$0xff] }
  0x22   : > { %v1744_v45 = vpack.i.bf16 %v471_v44, %v455_v43  ;;  %v472_v49 = vld [vmem:[%s1955_s25 + $0xd8] sm:$0xff]  ;;  %v737_v51 = vld [vmem:[%s2253_s4 + $0x28] sm:$0xff]  ;;  %v909_v52 = vld [vmem:[%s2255_s6 + $0x30] sm:$0xff]  ;;  %p1783_p13 = pneg %p1782_p12 }
  0x23   : > { %v1746_v50 = vpack.i.bf16 %v472_v49, %v456_v48  ;;  %v457_v53 = vld [vmem:[%s1955_s25 + $0x60] sm:$0xff]  ;;  %v735_v56 = vld [vmem:[%s2253_s4 + $0x18] sm:$0xff]  ;;  %v458_v58 = vld [vmem:[%s1955_s25 + $0x68] sm:$0xff] }
  0x24   : > { %v473_v54 = vld [vmem:[%s1955_s25 + $0xe0] sm:$0xff]  ;;  %v474_v59 = vld [vmem:[%s1955_s25 + $0xe8] sm:$0xff]  ;;  %v905_v62 = vld [vmem:[%s2255_s6 + $0x10] sm:$0xff]  ;;  %p1788_p3 = pnand %p1787_p2, %p1783_p13 }
  0x25   : > { %1727 = vxpose.xlu0.b32.cont [2/16] (narrow) %v1726_v6, 8  ;;  %v1748_v55 = vpack.i.bf16 %v473_v54, %v457_v53  ;;  %v907_v57 = vld [vmem:[%s2255_s6 + $0x20] sm:$0xff]  ;;  %v1750_v60 = vpack.i.bf16 %v474_v59, %v458_v58  ;;  %v733_v61 = vld [vmem:[%s2253_s4 + $0x8] sm:$0xff]  ;;  %v459_v63 = vld [vmem:[%s1955_s25 + $0x70] sm:$0xff] }
  0x26   : > { %v475_v0 = vld [vmem:[%s1955_s25 + $0xf0] sm:$0xff]  ;;  %v910_v2 = vld [vmem:[%s2255_s6 + $0x38] sm:$0xff]  ;;  %v903_v3 = vld [vmem:[%s2255_s6] sm:$0xff] }
  0x27   : > { %v1752_v1 = vpack.i.bf16 %v475_v0, %v459_v63  ;;  %v460_v4 = vld [vmem:[%s1955_s25 + $0x78] sm:$0xff]  ;;  %v908_v7 = vld [vmem:[%s2255_s6 + $0x28] sm:$0xff]  ;;  %v1079_v8 = vld [vmem:[%s2257_s8 + $0x30] sm:$0xff] }
  0x28   : > { %571 = vperm.xlu1 %1761, %v553_v22   ;;  %576 = vperm.xlu2 %1762, %v554_v36   ;;  %v476_v5 = vld [vmem:[%s1955_s25 + $0xf8] sm:$0xff]  ;;  %v1077_v10 = vld [vmem:[%s2257_s8 + $0x20] sm:$0xff]  ;;  %v904_v11 = vld [vmem:[%s2255_s6 + $0x8] sm:$0xff]  ;;  %s1466_s25 = sshll.u32 %s436_s26, 4  ;;  %s1467_s25 = int_to_ptr.vmem [resolvable:$true] %s1466_s25 }
  0x29   : > { %v1754_v6 = vpack.i.bf16 %v476_v5, %v460_v4  ;;  %v1080_v14 = vld [vmem:[%s2257_s8 + $0x38] sm:$0xff]  ;;  %v1073_v15 = vld [vmem:[%s2257_s8] sm:$0xff]  ;;  %v1078_v16 = vld [vmem:[%s2257_s8 + $0x28] sm:$0xff] }
  0x2a   : > { %v1076_v18 = vld [vmem:[%s2257_s8 + $0x18] sm:$0xff]  ;;  %v1248_v19 = vld [vmem:[%s2259_s10 + $0x28] sm:$0xff]  ;;  %v1247_v34 = vld [vmem:[%s2259_s10 + $0x20] sm:$0xff] }
  0x2b   : > { %v1074_v26 = vld [vmem:[%s2257_s8 + $0x8] sm:$0xff]  ;;  %v1664_v33 = vld [vmem:[%s2268_s1 + $0x18] sm:$0xff]  ;;  %v1245_v36 = vld [vmem:[%s2259_s10 + $0x10] sm:$0xff] }
  0x2c   : > { %v1243_v38 = vld [vmem:[%s2259_s10] sm:$0xff] }
  0x2d   : > { %1729 = vxpose.xlu0.b32.cont [3/16] (narrow) %v1728_v9, 8  ;;  %v906_v9 = vld [vmem:[%s2255_s6 + $0x18] sm:$0xff]  ;;  %v1406_v39 = vld [vmem:[#allocation2] sm:$0x1] }
  0x30   : > { %561 = vperm.xlu1 %1761, %v551_v27   ;;  %566 = vperm.xlu2 %1762, %v552_v41   ;;  %v1246_v27 = vld [vmem:[%s2259_s10 + $0x18] sm:$0xff] }
  0x35   : > { %1731 = vxpose.xlu0.b32.cont [4/16] (narrow) %v1730_v13, 8  ;;  %v1075_v13 = vld [vmem:[%s2257_s8 + $0x10] sm:$0xff] }
  0x38   : > { %772 = vperm.xlu1 %1761, %v738_v32   ;;  %777 = vperm.xlu2 %1762, %v739_v46   ;;  %v1661_v32 = vld [vmem:[%s2268_s1] sm:$0xff] }
  0x3d   : > { %1733 = vxpose.xlu0.b32.cont [5/16] (narrow) %v1732_v17, 8  ;;  %v1250_v17 = vld [vmem:[%s2259_s10 + $0x38] sm:$0xff] }
  0x40   : > { %762 = vperm.xlu1 %1761, %v736_v37   ;;  %767 = vperm.xlu2 %1762, %v737_v51   ;;  %v1662_v37 = vld [vmem:[%s2268_s1 + $0x8] sm:$0xff] }
  0x45   : > { %1735 = vxpose.xlu0.b32.cont [6/16] (narrow) %v1734_v21, 8  ;;  %v634_v21 = vsel %vm632_vm0, 4294967295, %v1829_v20 }
  0x48   : > { %752 = vperm.xlu1 %1761, %v734_v42   ;;  %757 = vperm.xlu2 %1762, %v735_v56  }
  0x4d   : > { %1737 = vxpose.xlu0.b32.cont [7/16] (narrow) %v1736_v25, 8  ;;  %v635_v25 = vsel %vm633_vm1, %v634_v21, 0 }
  0x50   : > { %742 = vperm.xlu1 %1761, %v732_v47   ;;  %747 = vperm.xlu2 %1762, %v733_v61  }
  0x55   : > { %1739 = vxpose.xlu0.b32.cont [8/16] (narrow) %v1738_v30, 8 }
  0x58   : > { %943 = vperm.xlu1 %1761, %v909_v52   ;;  %948 = vperm.xlu2 %1762, %v910_v2  }
  0x5d   : > { %1741 = vxpose.xlu0.b32.cont [9/16] (narrow) %v1740_v35, 8  ;;  %v1244_v35 = vld [vmem:[%s2259_s10 + $0x8] sm:$0xff] }
  0x60   : > { %933 = vperm.xlu1 %1761, %v907_v57   ;;  %938 = vperm.xlu2 %1762, %v908_v7  }
  0x65   : > { %1743 = vxpose.xlu0.b32.cont [10/16] (narrow) %v1742_v40, 8  ;;  %v1663_v40 = vld [vmem:[%s2268_s1 + $0x10] sm:$0xff] }
  0x68   : > { %923 = vperm.xlu1 %1761, %v905_v62   ;;  %928 = vperm.xlu2 %1762, %v906_v9  }
  0x6d   : > { %1745 = vxpose.xlu0.b32.cont [11/16] (narrow) %v1744_v45, 8 }
  0x70   : > { %913 = vperm.xlu1 %1761, %v903_v3   ;;  %918 = vperm.xlu2 %1762, %v904_v11  }
  0x75   : > { %1747 = vxpose.xlu0.b32.cont [12/16] (narrow) %v1746_v50, 8  ;;  %v582_v50 = vpop.permute.xlu2 %581 }
  0x78   : > { %1113 = vperm.xlu1 %1761, %v1079_v8   ;;  %1118 = vperm.xlu2 %1762, %v1080_v14  }
  0x7d   : > { %1749 = vxpose.xlu0.b32.cont [13/16] (narrow) %v1748_v55, 8  ;;  %v587_v63 = vpop.permute.xlu2 %586 }
  0x80   : > { %1103 = vperm.xlu1 %1761, %v1077_v10   ;;  %1108 = vperm.xlu2 %1762, %v1078_v16  }
  0x85   : > { %1751 = vxpose.xlu0.b32.cont [14/16] (narrow) %v1750_v60, 8  ;;  %v577_v4 = vpop.permute.xlu2 %576 }
  0x88   : > { %1093 = vperm.xlu1 %1761, %v1075_v13   ;;  %1098 = vperm.xlu2 %1762, %v1076_v18  }
  0x8a   : > { %v592_v43 = vpop.permute.xlu1 %591 }
  0x8d   : > { %1753 = vxpose.xlu0.b32.cont [15/16] (narrow) %v1752_v1, 8  ;;  %v567_v18 = vpop.permute.xlu2 %566 }
  0x90   : > { %1083 = vperm.xlu1 %1761, %v1073_v15   ;;  %1088 = vperm.xlu2 %1762, %v1074_v26  }
  0x92   : > { %v597_v51 = vpop.permute.xlu1 %596 }
  0x95   : > { %1755 = vxpose.xlu0.b32.end [16/16] (narrow) %v1754_v6, 8 }
  0x98   : > { %1288 = vperm.xlu1 %1761, %v1250_v17   ;;  %1273 = vperm.xlu2 %1762, %v1247_v34  }
  0x9a   : > { %v572_v5 = vpop.permute.xlu1 %571 }
  0xa0   : > { %1278 = vperm.xlu1 %1761, %v1248_v19   ;;  %1263 = vperm.xlu2 %1762, %v1245_v36  }
  0xa8   : > { %1268 = vperm.xlu1 %1761, %v1246_v27   ;;  %1253 = vperm.xlu2 %1762, %v1243_v38  }
  0xb0   : > { %1258 = vperm.xlu1 %1761, %v1244_v35   ;;  %1409 = vperm.xlu2 %1762, %v1406_v39  }
  0xc1   : > { %v1756_v22 = vpop.trf.xlu0 }
  0xc2   : > { %v1757_v23 = vunpack.i.l.bf16 %v1756_v22  ;;  %v1760_v24 = vunpack.i.h.bf16 %v1756_v22 }
  0xc4   : > { %v541_v28 = vpack.c.bf16 %v1757_v23, %v1757_v23  ;;  %v542_v29 = vpack.c.bf16 %v1760_v24, %v1760_v24 }
  0xc6   : > { %v637_v30 = vand.u32 %v635_v25, %v541_v28  ;;  %v640_v31 = vand.u32 %v635_v25, %v542_v29  ;;  %v562_v25 = vpop.permute.xlu1 %561 }
  0xc8   : > { %649 = vmatpush.bf16.msra.mxu0 %v637_v30  ;;  %1681 = vmatpush.bf16.msra.mxu2 %v637_v30 }
  0xc9   : > { %678 = vmatpush.bf16.msra.mxu1 %v640_v31  ;;  %1682 = vmatpush.bf16.msra.mxu3 %v640_v31 }
  0xcb   : > { %1551 = vmatmul.msk.bf16.vlgmr.msra.gmra.mxu0 %vm619_vm2, %v1661_v32  ;;  %1554 = vmatmul.msk.bf16.vlgmr.msra.gmra.mxu2 %vm619_vm2, %v1664_v33 }
  0xcc   : > { %1555 = vmatmul.msk.bf16.vlgmr.msra.gmra.mxu1 %vm619_vm2, %v1661_v32  ;;  %1558 = vmatmul.msk.bf16.vlgmr.msra.gmra.mxu3 %vm619_vm2, %v1664_v33 }
  0xdb   : > { %1552 = vmatmul.msk.bf16.gmra.mxu0 %vm619_vm2, %v1662_v37 }
  0xdc   : > { %1556 = vmatmul.msk.bf16.gmra.mxu1 %vm619_vm2, %v1662_v37 }
  0xeb   : > { %1553 = vmatmul.msk.bf16.gmra.mxu0 %vm619_vm2, %v1663_v40 }
  0xec   : > { %1557 = vmatmul.msk.bf16.gmra.mxu1 %vm619_vm2, %v1663_v40 }
  0xfc   : > { %1763 = vset.pattern.permute.xlu0 %v1828_v12 }
 0x148   : > { %v651_v41 = vpop.f32.mrf.mxu0 }
 0x149   : > { %v680_v42 = vpop.f32.mrf.mxu1  ;;  %v652_v29 = vadd.f32 %v651_v41, %v562_v25  ;;  %v1666_v41 = vld [vmem:[%s2252_s3 + $0x8] sm:$0xff] }
 0x14a   : > { %v681_v31 = vadd.f32 %v680_v42, %v562_v25  ;;  %v1667_v42 = vld [vmem:[%s2252_s3 + $0x10] sm:$0xff] }
 0x14b   : > { %v700_v37 = vmax.f32 %v652_v29, 0.0 }
 0x14c   : > { %v701_v38 = vmax.f32 %v681_v31, 0.0 }
 0x14e   : > { %v666_v44 = vpop.f32.mrf.mxu2 }
 0x14f   : > { %v695_v45 = vpop.f32.mrf.mxu3  ;;  %v667_v48 = vadd.f32 %v666_v44, %v592_v43  ;;  %v1668_v44 = vld [vmem:[%s2252_s3 + $0x18] sm:$0xff] }
 0x150   : > { %v653_v46 = vpop.f32.mrf.mxu0  ;;  %v696_v49 = vadd.f32 %v695_v45, %v592_v43  ;;  %v1665_v43 = vld [vmem:[%s2252_s3] sm:$0xff] }
 0x151   : > { %v682_v47 = vpop.f32.mrf.mxu1  ;;  %v712_v53 = vmax.f32 %v667_v48, 0.0  ;;  %v654_v22 = vadd.f32 %v653_v46, %v567_v18 }
 0x152   : > { %v713_v57 = vmax.f32 %v696_v49, 0.0  ;;  %v683_v26 = vadd.f32 %v682_v47, %v567_v18 }
 0x153   : > { %v702_v33 = vmax.f32 %v654_v22, 0.0 }
 0x154   : > { %v703_v35 = vmax.f32 %v683_v26, 0.0 }
 0x155   : > { %v716_v39 = vpack.c.bf16 %v702_v33, %v700_v37 }
 0x156   : > { %v668_v52 = vpop.f32.mrf.mxu2  ;;  %v717_v40 = vpack.c.bf16 %v703_v35, %v701_v38 }
 0x157   : > { %v669_v54 = vadd.f32 %v668_v52, %v597_v51  ;;  %v697_v55 = vpop.f32.mrf.mxu3 }
 0x158   : > { %v656_v56 = vpop.f32.mrf.mxu0  ;;  %v698_v58 = vadd.f32 %v697_v55, %v597_v51  ;;  %v778_v55 = vpop.permute.xlu2 %777 }
 0x159   : > { %v685_v59 = vpop.f32.mrf.mxu1  ;;  %v714_v12 = vmax.f32 %v669_v54, 0.0  ;;  %v657_v15 = vadd.f32 %v656_v56, %v572_v5  ;;  %v773_v56 = vpop.permute.xlu1 %772 }
 0x15a   : > { %v715_v60 = vmax.f32 %v698_v58, 0.0  ;;  %v686_v19 = vadd.f32 %v685_v59, %v572_v5 }
 0x15b   : > { %v722_v61 = vpack.c.bf16 %v714_v12, %v712_v53  ;;  %v704_v30 = vmax.f32 %v657_v15, 0.0 }
 0x15c   : > { %v723_v62 = vpack.c.bf16 %v715_v60, %v713_v57  ;;  %v705_v32 = vmax.f32 %v686_v19, 0.0 }
 0x15d   : > { %817 = vmatpush.bf16.msrb.mxu2 %v722_v61 }
 0x15e   : > { %846 = vmatpush.bf16.msrb.mxu3 %v723_v62 }
 0x160   : > { %v658_v0 = vpop.f32.mrf.mxu0  ;;  %v768_v59 = vpop.permute.xlu2 %767 }
 0x161   : > { %v687_v1 = vpop.f32.mrf.mxu1  ;;  %v659_v9 = vadd.f32 %v658_v0, %v577_v4  ;;  %v763_v12 = vpop.permute.xlu1 %762 }
 0x162   : > { %v688_v13 = vadd.f32 %v687_v1, %v577_v4 }
 0x163   : > { %v706_v23 = vmax.f32 %v659_v9, 0.0 }
 0x164   : > { %v707_v27 = vmax.f32 %v688_v13, 0.0 }
 0x165   : > { %v718_v34 = vpack.c.bf16 %v706_v23, %v704_v30 }
 0x166   : > { %v719_v36 = vpack.c.bf16 %v707_v27, %v705_v32 }
 0x168   : > { %v661_v2 = vpop.f32.mrf.mxu0  ;;  %v758_v62 = vpop.permute.xlu2 %757 }
 0x169   : > { %v690_v3 = vpop.f32.mrf.mxu1  ;;  %v662_v6 = vadd.f32 %v661_v2, %v582_v50  ;;  %v753_v0 = vpop.permute.xlu1 %752 }
 0x16a   : > { %v691_v7 = vadd.f32 %v690_v3, %v582_v50 }
 0x16b   : > { %v708_v16 = vmax.f32 %v662_v6, 0.0 }
 0x16c   : > { %v709_v20 = vmax.f32 %v691_v7, 0.0 }
 0x170   : > { %v663_v8 = vpop.f32.mrf.mxu0  ;;  %v748_v23 = vpop.permute.xlu2 %747 }
 0x171   : > { %v664_v10 = vadd.f32 %v663_v8, %v587_v63  ;;  %v692_v11 = vpop.f32.mrf.mxu1  ;;  %v743_v29 = vpop.permute.xlu1 %742 }
 0x172   : > { %v693_v14 = vadd.f32 %v692_v11, %v587_v63 }
 0x173   : > { %v710_v17 = vmax.f32 %v664_v10, 0.0 }
 0x174   : > { %v711_v21 = vmax.f32 %v693_v14, 0.0 }
 0x175   : > { %v720_v24 = vpack.c.bf16 %v710_v17, %v708_v16 }
 0x176   : > { %v721_v28 = vpack.c.bf16 %v711_v21, %v709_v20 }
 0x177   : > { %818 = vmatpush.bf16.msrb.mxu2 %v720_v24 }
 0x178   : > { %847 = vmatpush.bf16.msrb.mxu3 %v721_v28 }
 0x17b   : > { %819 = vmatpush.bf16.msrb.mxu2 %v718_v34 }
 0x17c   : > { %848 = vmatpush.bf16.msrb.mxu3 %v719_v36 }
 0x17f   : > { %820 = vmatpush.bf16.msrb.mxu2 %v716_v39 }
 0x180   : > { %849 = vmatpush.bf16.msrb.mxu3 %v717_v40 }
 0x182   : > { %1575 = vmatmul.msk.bf16.vlgmr.msrb.gmra.mxu2 %vm800_vm3, %v1665_v43 }
 0x183   : > { %1579 = vmatmul.msk.bf16.vlgmr.msrb.gmra.mxu3 %vm800_vm3, %v1665_v43 }
 0x192   : > { %1576 = vmatmul.msk.bf16.gmra.mxu2 %vm800_vm3, %v1666_v41 }
 0x193   : > { %1580 = vmatmul.msk.bf16.gmra.mxu3 %vm800_vm3, %v1666_v41 }
 0x1a2   : > { %1577 = vmatmul.msk.bf16.gmra.mxu2 %vm800_vm3, %v1667_v42 }
 0x1a3   : > { %1581 = vmatmul.msk.bf16.gmra.mxu3 %vm800_vm3, %v1667_v42 }
 0x1b2   : > { %1578 = vmatmul.msk.bf16.gmra.mxu2 %vm800_vm3, %v1668_v44 }
 0x1b3   : > { %1582 = vmatmul.msk.bf16.gmra.mxu3 %vm800_vm3, %v1668_v44 }
 0x205   : > { %v822_v45 = vpop.f32.mrf.mxu2 }
 0x206   : > { %v851_v46 = vpop.f32.mrf.mxu3  ;;  %v823_v33 = vadd.f32 %v822_v45, %v743_v29  ;;  %v1670_v45 = vld [vmem:[%s2254_s5 + $0x8] sm:$0xff] }
 0x207   : > { %v852_v35 = vadd.f32 %v851_v46, %v743_v29  ;;  %v1671_v46 = vld [vmem:[%s2254_s5 + $0x10] sm:$0xff] }
 0x208   : > { %v871_v43 = vmax.f32 %v823_v33, 0.0 }
 0x209   : > { %v872_v41 = vmax.f32 %v852_v35, 0.0 }
 0x20d   : > { %v824_v47 = vpop.f32.mrf.mxu2 }
 0x20e   : > { %v853_v48 = vpop.f32.mrf.mxu3  ;;  %v825_v26 = vadd.f32 %v824_v47, %v748_v23  ;;  %v1669_v47 = vld [vmem:[%s2254_s5] sm:$0xff] }
 0x20f   : > { %v854_v30 = vadd.f32 %v853_v48, %v748_v23  ;;  %v1672_v48 = vld [vmem:[%s2254_s5 + $0x18] sm:$0xff] }
 0x210   : > { %v873_v37 = vmax.f32 %v825_v26, 0.0 }
 0x211   : > { %v874_v39 = vmax.f32 %v854_v30, 0.0 }
 0x212   : > { %v887_v42 = vpack.c.bf16 %v873_v37, %v871_v43 }
 0x213   : > { %v888_v44 = vpack.c.bf16 %v874_v39, %v872_v41 }
 0x215   : > { %v827_v49 = vpop.f32.mrf.mxu2 }
 0x216   : > { %v856_v50 = vpop.f32.mrf.mxu3  ;;  %v828_v21 = vadd.f32 %v827_v49, %v753_v0 }
 0x217   : > { %v857_v24 = vadd.f32 %v856_v50, %v753_v0 }
 0x218   : > { %v875_v34 = vmax.f32 %v828_v21, 0.0 }
 0x219   : > { %v876_v36 = vmax.f32 %v857_v24, 0.0 }
 0x21d   : > { %v829_v51 = vpop.f32.mrf.mxu2 }
 0x21e   : > { %v858_v52 = vpop.f32.mrf.mxu3  ;;  %v830_v15 = vadd.f32 %v829_v51, %v758_v62 }
 0x21f   : > { %v859_v18 = vadd.f32 %v858_v52, %v758_v62 }
 0x220   : > { %v877_v27 = vmax.f32 %v830_v15, 0.0 }
 0x221   : > { %v878_v31 = vmax.f32 %v859_v18, 0.0 }
 0x222   : > { %v889_v38 = vpack.c.bf16 %v877_v27, %v875_v34 }
 0x223   : > { %v890_v40 = vpack.c.bf16 %v878_v31, %v876_v36 }
 0x225   : > { %v832_v53 = vpop.f32.mrf.mxu2 }
 0x226   : > { %v861_v54 = vpop.f32.mrf.mxu3  ;;  %v833_v8 = vadd.f32 %v832_v53, %v763_v12 }
 0x227   : > { %v862_v11 = vadd.f32 %v861_v54, %v763_v12  ;;  %v944_v12 = vpop.permute.xlu1 %943 }
 0x228   : > { %v879_v22 = vmax.f32 %v833_v8, 0.0 }
 0x229   : > { %v880_v25 = vmax.f32 %v862_v11, 0.0 }
 0x22d   : > { %v834_v57 = vpop.f32.mrf.mxu2 }
 0x22e   : > { %v863_v58 = vpop.f32.mrf.mxu3  ;;  %v835_v3 = vadd.f32 %v834_v57, %v768_v59 }
 0x22f   : > { %v864_v6 = vadd.f32 %v863_v58, %v768_v59  ;;  %v949_v59 = vpop.permute.xlu2 %948 }
 0x230   : > { %v881_v16 = vmax.f32 %v835_v3, 0.0 }
 0x231   : > { %v882_v19 = vmax.f32 %v864_v6, 0.0 }
 0x232   : > { %v891_v28 = vpack.c.bf16 %v881_v16, %v879_v22 }
 0x233   : > { %v892_v32 = vpack.c.bf16 %v882_v19, %v880_v25 }
 0x235   : > { %v837_v60 = vpop.f32.mrf.mxu2 }
 0x236   : > { %v866_v61 = vpop.f32.mrf.mxu3  ;;  %v838_v63 = vadd.f32 %v837_v60, %v773_v56 }
 0x237   : > { %v867_v1 = vadd.f32 %v866_v61, %v773_v56  ;;  %v939_v62 = vpop.permute.xlu2 %938 }
 0x238   : > { %v883_v9 = vmax.f32 %v838_v63, 0.0  ;;  %v934_v63 = vpop.permute.xlu1 %933 }
 0x239   : > { %v884_v13 = vmax.f32 %v867_v1, 0.0 }
 0x23d   : > { %v839_v2 = vpop.f32.mrf.mxu2 }
 0x23e   : > { %v840_v4 = vadd.f32 %v839_v2, %v778_v55  ;;  %v868_v5 = vpop.f32.mrf.mxu3 }
 0x23f   : > { %v869_v7 = vadd.f32 %v868_v5, %v778_v55  ;;  %v929_v2 = vpop.permute.xlu2 %928 }
 0x240   : > { %v885_v10 = vmax.f32 %v840_v4, 0.0  ;;  %v924_v4 = vpop.permute.xlu1 %923 }
 0x241   : > { %v886_v14 = vmax.f32 %v869_v7, 0.0 }
 0x242   : > { %v893_v17 = vpack.c.bf16 %v885_v10, %v883_v9 }
 0x243   : > { %v894_v20 = vpack.c.bf16 %v886_v14, %v884_v13 }
 0x244   : > { %987 = vmatpush.bf16.msrb.mxu0 %v893_v17 }
 0x245   : > { %1016 = vmatpush.bf16.msrb.mxu1 %v894_v20 }
 0x247   : > { %v919_v27 = vpop.permute.xlu2 %918 }
 0x248   : > { %988 = vmatpush.bf16.msrb.mxu0 %v891_v28  ;;  %v914_v33 = vpop.permute.xlu1 %913 }
 0x249   : > { %1017 = vmatpush.bf16.msrb.mxu1 %v892_v32 }
 0x24c   : > { %989 = vmatpush.bf16.msrb.mxu0 %v889_v38 }
 0x24d   : > { %1018 = vmatpush.bf16.msrb.mxu1 %v890_v40 }
 0x250   : > { %990 = vmatpush.bf16.msrb.mxu0 %v887_v42 }
 0x251   : > { %1019 = vmatpush.bf16.msrb.mxu1 %v888_v44 }
 0x253   : > { %1599 = vmatmul.msk.bf16.vlgmr.msrb.gmra.mxu0 %vm800_vm3, %v1669_v47 }
 0x254   : > { %1603 = vmatmul.msk.bf16.vlgmr.msrb.gmra.mxu1 %vm800_vm3, %v1669_v47 }
 0x263   : > { %1600 = vmatmul.msk.bf16.gmra.mxu0 %vm800_vm3, %v1670_v45 }
 0x264   : > { %1604 = vmatmul.msk.bf16.gmra.mxu1 %vm800_vm3, %v1670_v45 }
 0x273   : > { %1601 = vmatmul.msk.bf16.gmra.mxu0 %vm800_vm3, %v1671_v46 }
 0x274   : > { %1605 = vmatmul.msk.bf16.gmra.mxu1 %vm800_vm3, %v1671_v46 }
 0x283   : > { %1602 = vmatmul.msk.bf16.gmra.mxu0 %vm800_vm3, %v1672_v48 }
 0x284   : > { %1606 = vmatmul.msk.bf16.gmra.mxu1 %vm800_vm3, %v1672_v48 }
 0x2d0   : > { %v992_v49 = vpop.f32.mrf.mxu0 }
 0x2d1   : > { %v1021_v50 = vpop.f32.mrf.mxu1  ;;  %v993_v37 = vadd.f32 %v992_v49, %v914_v33  ;;  %v1674_v49 = vld [vmem:[%s2256_s7 + $0x8] sm:$0xff] }
 0x2d2   : > { %v1022_v39 = vadd.f32 %v1021_v50, %v914_v33  ;;  %v1675_v50 = vld [vmem:[%s2256_s7 + $0x10] sm:$0xff] }
 0x2d3   : > { %v1041_v47 = vmax.f32 %v993_v37, 0.0 }
 0x2d4   : > { %v1042_v45 = vmax.f32 %v1022_v39, 0.0 }
 0x2d8   : > { %v994_v51 = vpop.f32.mrf.mxu0 }
 0x2d9   : > { %v1023_v52 = vpop.f32.mrf.mxu1  ;;  %v995_v30 = vadd.f32 %v994_v51, %v919_v27  ;;  %v1673_v51 = vld [vmem:[%s2256_s7] sm:$0xff] }
 0x2da   : > { %v1024_v34 = vadd.f32 %v1023_v52, %v919_v27  ;;  %v1676_v52 = vld [vmem:[%s2256_s7 + $0x18] sm:$0xff] }
 0x2db   : > { %v1043_v43 = vmax.f32 %v995_v30, 0.0 }
 0x2dc   : > { %v1044_v42 = vmax.f32 %v1024_v34, 0.0 }
 0x2dd   : > { %v1057_v46 = vpack.c.bf16 %v1043_v43, %v1041_v47 }
 0x2de   : > { %v1058_v48 = vpack.c.bf16 %v1044_v42, %v1042_v45 }
 0x2e0   : > { %v997_v53 = vpop.f32.mrf.mxu0 }
 0x2e1   : > { %v1026_v54 = vpop.f32.mrf.mxu1  ;;  %v998_v25 = vadd.f32 %v997_v53, %v924_v4 }
 0x2e2   : > { %v1027_v28 = vadd.f32 %v1026_v54, %v924_v4 }
 0x2e3   : > { %v1045_v38 = vmax.f32 %v998_v25, 0.0 }
 0x2e4   : > { %v1046_v40 = vmax.f32 %v1027_v28, 0.0 }
 0x2e8   : > { %v999_v55 = vpop.f32.mrf.mxu0 }
 0x2e9   : > { %v1028_v56 = vpop.f32.mrf.mxu1  ;;  %v1000_v19 = vadd.f32 %v999_v55, %v929_v2 }
 0x2ea   : > { %v1029_v22 = vadd.f32 %v1028_v56, %v929_v2 }
 0x2eb   : > { %v1047_v31 = vmax.f32 %v1000_v19, 0.0 }
 0x2ec   : > { %v1048_v35 = vmax.f32 %v1029_v22, 0.0 }
 0x2ed   : > { %v1059_v41 = vpack.c.bf16 %v1047_v31, %v1045_v38 }
 0x2ee   : > { %v1060_v44 = vpack.c.bf16 %v1048_v35, %v1046_v40 }
 0x2f0   : > { %v1002_v57 = vpop.f32.mrf.mxu0 }
 0x2f1   : > { %v1031_v58 = vpop.f32.mrf.mxu1  ;;  %v1003_v13 = vadd.f32 %v1002_v57, %v934_v63 }
 0x2f2   : > { %v1032_v16 = vadd.f32 %v1031_v58, %v934_v63  ;;  %v1114_v63 = vpop.permute.xlu1 %1113 }
 0x2f3   : > { %v1049_v26 = vmax.f32 %v1003_v13, 0.0 }
 0x2f4   : > { %v1050_v29 = vmax.f32 %v1032_v16, 0.0 }
 0x2f8   : > { %v1004_v60 = vpop.f32.mrf.mxu0 }
 0x2f9   : > { %v1033_v61 = vpop.f32.mrf.mxu1  ;;  %v1005_v7 = vadd.f32 %v1004_v60, %v939_v62 }
 0x2fa   : > { %v1034_v10 = vadd.f32 %v1033_v61, %v939_v62  ;;  %v1119_v62 = vpop.permute.xlu2 %1118 }
 0x2fb   : > { %v1051_v20 = vmax.f32 %v1005_v7, 0.0 }
 0x2fc   : > { %v1052_v23 = vmax.f32 %v1034_v10, 0.0 }
 0x2fd   : > { %v1061_v32 = vpack.c.bf16 %v1051_v20, %v1049_v26 }
 0x2fe   : > { %v1062_v36 = vpack.c.bf16 %v1052_v23, %v1050_v29 }
 0x300   : > { %v1007_v0 = vpop.f32.mrf.mxu0 }
 0x301   : > { %v1036_v1 = vpop.f32.mrf.mxu1  ;;  %v1008_v3 = vadd.f32 %v1007_v0, %v944_v12 }
 0x302   : > { %v1037_v5 = vadd.f32 %v1036_v1, %v944_v12  ;;  %v1109_v2 = vpop.permute.xlu2 %1108 }
 0x303   : > { %v1053_v14 = vmax.f32 %v1008_v3, 0.0  ;;  %v1104_v3 = vpop.permute.xlu1 %1103 }
 0x304   : > { %v1054_v17 = vmax.f32 %v1037_v5, 0.0 }
 0x308   : > { %v1009_v6 = vpop.f32.mrf.mxu0 }
 0x309   : > { %v1010_v8 = vadd.f32 %v1009_v6, %v949_v59  ;;  %v1038_v9 = vpop.f32.mrf.mxu1 }
 0x30a   : > { %v1039_v11 = vadd.f32 %v1038_v9, %v949_v59  ;;  %v1099_v6 = vpop.permute.xlu2 %1098 }
 0x30b   : > { %v1055_v15 = vmax.f32 %v1010_v8, 0.0  ;;  %v1094_v8 = vpop.permute.xlu1 %1093 }
 0x30c   : > { %v1056_v18 = vmax.f32 %v1039_v11, 0.0 }
 0x30d   : > { %v1063_v21 = vpack.c.bf16 %v1055_v15, %v1053_v14 }
 0x30e   : > { %v1064_v24 = vpack.c.bf16 %v1056_v18, %v1054_v17 }
 0x30f   : > { %1157 = vmatpush.bf16.msra.mxu2 %v1063_v21 }
 0x310   : > { %1186 = vmatpush.bf16.msra.mxu3 %v1064_v24 }
 0x312   : > { %v1089_v31 = vpop.permute.xlu2 %1088 }
 0x313   : > { %1158 = vmatpush.bf16.msra.mxu2 %v1061_v32  ;;  %v1084_v37 = vpop.permute.xlu1 %1083 }
 0x314   : > { %1187 = vmatpush.bf16.msra.mxu3 %v1062_v36 }
 0x317   : > { %1159 = vmatpush.bf16.msra.mxu2 %v1059_v41 }
 0x318   : > { %1188 = vmatpush.bf16.msra.mxu3 %v1060_v44 }
 0x31b   : > { %1160 = vmatpush.bf16.msra.mxu2 %v1057_v46 }
 0x31c   : > { %1189 = vmatpush.bf16.msra.mxu3 %v1058_v48 }
 0x31e   : > { %1623 = vmatmul.msk.bf16.vlgmr.msra.gmra.mxu2 %vm800_vm3, %v1673_v51 }
 0x31f   : > { %1627 = vmatmul.msk.bf16.vlgmr.msra.gmra.mxu3 %vm800_vm3, %v1673_v51 }
 0x32e   : > { %1624 = vmatmul.msk.bf16.gmra.mxu2 %vm800_vm3, %v1674_v49 }
 0x32f   : > { %1628 = vmatmul.msk.bf16.gmra.mxu3 %vm800_vm3, %v1674_v49 }
 0x33e   : > { %1625 = vmatmul.msk.bf16.gmra.mxu2 %vm800_vm3, %v1675_v50 }
 0x33f   : > { %1629 = vmatmul.msk.bf16.gmra.mxu3 %vm800_vm3, %v1675_v50 }
 0x34e   : > { %1626 = vmatmul.msk.bf16.gmra.mxu2 %vm800_vm3, %v1676_v52 }
 0x34f   : > { %1630 = vmatmul.msk.bf16.gmra.mxu3 %vm800_vm3, %v1676_v52 }
 0x3a1   : > { %v1162_v53 = vpop.f32.mrf.mxu2 }
 0x3a2   : > { %v1191_v54 = vpop.f32.mrf.mxu3  ;;  %v1163_v43 = vadd.f32 %v1162_v53, %v1084_v37  ;;  %v1678_v53 = vld [vmem:[%s2258_s9 + $0x8] sm:$0xff] }
 0x3a3   : > { %v1192_v42 = vadd.f32 %v1191_v54, %v1084_v37  ;;  %v1249_v54 = vld [vmem:[%s2259_s10 + $0x30] sm:$0xff] }
 0x3a4   : > { %v1211_v51 = vmax.f32 %v1163_v43, 0.0  ;;  %1283 = vperm.xlu0 %1763, %v1249_v54  }
 0x3a5   : > { %v1212_v49 = vmax.f32 %v1192_v42, 0.0 }
 0x3a9   : > { %v1164_v55 = vpop.f32.mrf.mxu2 }
 0x3aa   : > { %v1193_v56 = vpop.f32.mrf.mxu3  ;;  %v1165_v34 = vadd.f32 %v1164_v55, %v1089_v31  ;;  %v1677_v55 = vld [vmem:[%s2258_s9] sm:$0xff] }
 0x3ab   : > { %v1194_v38 = vadd.f32 %v1193_v56, %v1089_v31  ;;  %v1679_v56 = vld [vmem:[%s2258_s9 + $0x10] sm:$0xff] }
 0x3ac   : > { %v1213_v47 = vmax.f32 %v1165_v34, 0.0 }
 0x3ad   : > { %v1214_v46 = vmax.f32 %v1194_v38, 0.0 }
 0x3ae   : > { %v1227_v50 = vpack.c.bf16 %v1213_v47, %v1211_v51 }
 0x3af   : > { %v1228_v52 = vpack.c.bf16 %v1214_v46, %v1212_v49 }
 0x3b1   : > { %v1167_v57 = vpop.f32.mrf.mxu2 }
 0x3b2   : > { %v1196_v58 = vpop.f32.mrf.mxu3  ;;  %v1168_v29 = vadd.f32 %v1167_v57, %v1094_v8  ;;  %v1680_v57 = vld [vmem:[%s2258_s9 + $0x18] sm:$0xff] }
 0x3b3   : > { %v1197_v32 = vadd.f32 %v1196_v58, %v1094_v8 }
 0x3b4   : > { %v1215_v41 = vmax.f32 %v1168_v29, 0.0 }
 0x3b5   : > { %v1216_v44 = vmax.f32 %v1197_v32, 0.0 }
 0x3b9   : > { %v1169_v59 = vpop.f32.mrf.mxu2 }
 0x3ba   : > { %v1198_v12 = vpop.f32.mrf.mxu3  ;;  %v1170_v23 = vadd.f32 %v1169_v59, %v1099_v6 }
 0x3bb   : > { %v1199_v26 = vadd.f32 %v1198_v12, %v1099_v6 }
 0x3bc   : > { %v1217_v35 = vmax.f32 %v1170_v23, 0.0 }
 0x3bd   : > { %v1218_v39 = vmax.f32 %v1199_v26, 0.0 }
 0x3be   : > { %v1229_v45 = vpack.c.bf16 %v1217_v35, %v1215_v41 }
 0x3bf   : > { %v1230_v48 = vpack.c.bf16 %v1218_v39, %v1216_v44 }
 0x3c1   : > { %v1172_v60 = vpop.f32.mrf.mxu2 }
 0x3c2   : > { %v1201_v61 = vpop.f32.mrf.mxu3  ;;  %v1173_v17 = vadd.f32 %v1172_v60, %v1104_v3 }
 0x3c3   : > { %v1202_v20 = vadd.f32 %v1201_v61, %v1104_v3  ;;  %v1289_v3 = vpop.permute.xlu1 %1288 }
 0x3c4   : > { %v1219_v30 = vmax.f32 %v1173_v17, 0.0 }
 0x3c5   : > { %v1220_v33 = vmax.f32 %v1202_v20, 0.0 }
 0x3c9   : > { %v1174_v0 = vpop.f32.mrf.mxu2 }
 0x3ca   : > { %v1203_v1 = vpop.f32.mrf.mxu3  ;;  %v1175_v11 = vadd.f32 %v1174_v0, %v1109_v2 }
 0x3cb   : > { %v1204_v15 = vadd.f32 %v1203_v1, %v1109_v2  ;;  %v1279_v6 = vpop.permute.xlu1 %1278 }
 0x3cc   : > { %v1221_v24 = vmax.f32 %v1175_v11, 0.0 }
 0x3cd   : > { %v1222_v27 = vmax.f32 %v1204_v15, 0.0 }
 0x3ce   : > { %v1231_v36 = vpack.c.bf16 %v1221_v24, %v1219_v30 }
 0x3cf   : > { %v1232_v40 = vpack.c.bf16 %v1222_v27, %v1220_v33 }
 0x3d1   : > { %v1177_v4 = vpop.f32.mrf.mxu2 }
 0x3d2   : > { %v1206_v5 = vpop.f32.mrf.mxu3  ;;  %v1178_v7 = vadd.f32 %v1177_v4, %v1114_v63 }
 0x3d3   : > { %v1207_v9 = vadd.f32 %v1206_v5, %v1114_v63  ;;  %v1269_v11 = vpop.permute.xlu1 %1268 }
 0x3d4   : > { %v1223_v18 = vmax.f32 %v1178_v7, 0.0  ;;  %v1274_v7 = vpop.permute.xlu2 %1273 }
 0x3d5   : > { %v1224_v21 = vmax.f32 %v1207_v9, 0.0 }
 0x3d9   : > { %v1179_v10 = vpop.f32.mrf.mxu2 }
 0x3da   : > { %v1180_v13 = vadd.f32 %v1179_v10, %v1119_v62  ;;  %v1208_v14 = vpop.f32.mrf.mxu3 }
 0x3db   : > { %v1209_v16 = vadd.f32 %v1208_v14, %v1119_v62 }
 0x3dc   : > { %v1225_v19 = vmax.f32 %v1180_v13, 0.0  ;;  %v1264_v14 = vpop.permute.xlu2 %1263 }
 0x3dd   : > { %v1226_v22 = vmax.f32 %v1209_v16, 0.0 }
 0x3de   : > { %v1233_v25 = vpack.c.bf16 %v1225_v19, %v1223_v18 }
 0x3df   : > { %v1234_v28 = vpack.c.bf16 %v1226_v22, %v1224_v21 }
 0x3e0   : > { %1327 = vmatpush.bf16.msra.mxu0 %v1233_v25 }
 0x3e1   : > { %1356 = vmatpush.bf16.msra.mxu1 %v1234_v28 }
 0x3e4   : > { %1328 = vmatpush.bf16.msra.mxu0 %v1231_v36  ;;  %v1259_v36 = vpop.permute.xlu1 %1258  ;;  %v1254_v41 = vpop.permute.xlu2 %1253 }
 0x3e5   : > { %1357 = vmatpush.bf16.msra.mxu1 %v1232_v40 }
 0x3e8   : > { %1329 = vmatpush.bf16.msra.mxu0 %v1229_v45 }
 0x3e9   : > { %1358 = vmatpush.bf16.msra.mxu1 %v1230_v48 }
 0x3ec   : > { %1330 = vmatpush.bf16.msra.mxu0 %v1227_v50 }
 0x3ed   : > { %1359 = vmatpush.bf16.msra.mxu1 %v1228_v52 }
 0x3ef   : > { %1647 = vmatmul.msk.bf16.vlgmr.msra.gmra.mxu0 %vm800_vm3, %v1677_v55 }
 0x3f0   : > { %1651 = vmatmul.msk.bf16.vlgmr.msra.gmra.mxu1 %vm800_vm3, %v1677_v55 }
 0x3ff   : > { %1648 = vmatmul.msk.bf16.gmra.mxu0 %vm800_vm3, %v1678_v53 }
 0x400   : > { %1652 = vmatmul.msk.bf16.gmra.mxu1 %vm800_vm3, %v1678_v53 }
 0x40f   : > { %1649 = vmatmul.msk.bf16.gmra.mxu0 %vm800_vm3, %v1679_v56 }
 0x410   : > { %1653 = vmatmul.msk.bf16.gmra.mxu1 %vm800_vm3, %v1679_v56 }
 0x416   : > { %v1284_v10 = vpop.permute.xlu0 %1283 }
 0x41f   : > { %1650 = vmatmul.msk.bf16.gmra.mxu0 %vm800_vm3, %v1680_v57 }
 0x420   : > { %1654 = vmatmul.msk.bf16.gmra.mxu1 %vm800_vm3, %v1680_v57 }
 0x46c   : > { %v1332_v58 = vpop.f32.mrf.mxu0 }
 0x46d   : > { %v1361_v59 = vpop.f32.mrf.mxu1  ;;  %v1333_v45 = vadd.f32 %v1332_v58, %v1254_v41  ;;  %v1405_v58 = vld [vmem:[%s2260_s11] sm:$0x1] }
 0x46e   : > { %v1362_v48 = vadd.f32 %v1361_v59, %v1254_v41  ;;  %v1410_v59 = vpop.permute.xlu2 %1409 }
 0x46f   : > { %v1381_v53 = vmax.f32 %v1333_v45, 0.0 }
 0x470   : > { %v1382_v54 = vmax.f32 %v1362_v48, 0.0 }
 0x474   : > { %v1334_v12 = vpop.f32.mrf.mxu0 }
 0x475   : > { %v1363_v60 = vpop.f32.mrf.mxu1  ;;  %v1335_v39 = vadd.f32 %v1334_v12, %v1259_v36  ;;  %v1412_v12 = vperm.slane %v1410_v59, 0 }
 0x476   : > { %v1364_v42 = vadd.f32 %v1363_v60, %v1259_v36 }
 0x477   : > { %v1383_v49 = vmax.f32 %v1335_v39, 0.0 }
 0x478   : > { %v1384_v52 = vmax.f32 %v1364_v42, 0.0 }
 0x479   : > { %v1397_v56 = vpack.c.bf16 %v1383_v49, %v1381_v53 }
 0x47a   : > { %v1398_v57 = vpack.c.bf16 %v1384_v52, %v1382_v54 }
 0x47c   : > { %v1337_v61 = vpop.f32.mrf.mxu0 }
 0x47d   : > { %v1366_v62 = vpop.f32.mrf.mxu1  ;;  %v1338_v34 = vadd.f32 %v1337_v61, %v1264_v14  ;;  %v1448_v61 = vlaneseq }
 0x47e   : > { %v1367_v37 = vadd.f32 %v1366_v62, %v1264_v14 }
 0x47f   : > { %v1385_v46 = vmax.f32 %v1338_v34, 0.0  ;;  %vm1450_vm5 = vcmp.lt.s32.totalorder %v1448_v61, 256 }
 0x480   : > { %v1386_v51 = vmax.f32 %v1367_v37, 0.0 }
 0x484   : > { %v1339_v63 = vpop.f32.mrf.mxu0 }
 0x485   : > { %v1368_v0 = vpop.f32.mrf.mxu1  ;;  %v1340_v28 = vadd.f32 %v1339_v63, %v1269_v11 }
 0x486   : > { %v1369_v31 = vadd.f32 %v1368_v0, %v1269_v11 }
 0x487   : > { %v1387_v40 = vmax.f32 %v1340_v28, 0.0 }
 0x488   : > { %v1388_v44 = vmax.f32 %v1369_v31, 0.0 }
 0x489   : > { %v1399_v50 = vpack.c.bf16 %v1387_v40, %v1385_v46 }
 0x48a   : > { %v1400_v55 = vpack.c.bf16 %v1388_v44, %v1386_v51 }
 0x48c   : > { %v1342_v1 = vpop.f32.mrf.mxu0 }
 0x48d   : > { %v1371_v2 = vpop.f32.mrf.mxu1  ;;  %v1343_v22 = vadd.f32 %v1342_v1, %v1274_v7 }
 0x48e   : > { %v1372_v25 = vadd.f32 %v1371_v2, %v1274_v7 }
 0x48f   : > { %v1389_v35 = vmax.f32 %v1343_v22, 0.0 }
 0x490   : > { %v1390_v38 = vmax.f32 %v1372_v25, 0.0 }
 0x494   : > { %v1344_v4 = vpop.f32.mrf.mxu0 }
 0x495   : > { %v1373_v5 = vpop.f32.mrf.mxu1  ;;  %v1345_v17 = vadd.f32 %v1344_v4, %v1279_v6 }
 0x496   : > { %v1374_v20 = vadd.f32 %v1373_v5, %v1279_v6 }
 0x497   : > { %v1391_v29 = vmax.f32 %v1345_v17, 0.0 }
 0x498   : > { %v1392_v32 = vmax.f32 %v1374_v20, 0.0 }
 0x499   : > { %v1401_v43 = vpack.c.bf16 %v1391_v29, %v1389_v35 }
 0x49a   : > { %v1402_v47 = vpack.c.bf16 %v1392_v32, %v1390_v38 }
 0x49c   : > { %v1347_v8 = vpop.f32.mrf.mxu0 }
 0x49d   : > { %v1376_v9 = vpop.f32.mrf.mxu1  ;;  %v1348_v13 = vadd.f32 %v1347_v8, %v1284_v10 }
 0x49e   : > { %v1377_v15 = vadd.f32 %v1376_v9, %v1284_v10 }
 0x49f   : > { %v1393_v23 = vmax.f32 %v1348_v13, 0.0 }
 0x4a0   : > { %v1394_v26 = vmax.f32 %v1377_v15, 0.0 }
 0x4a4   : > { %v1349_v16 = vpop.f32.mrf.mxu0 }
 0x4a5   : > { %v1350_v18 = vadd.f32 %v1349_v16, %v1289_v3  ;;  %v1378_v19 = vpop.f32.mrf.mxu1 }
 0x4a6   : > { %v1379_v21 = vadd.f32 %v1378_v19, %v1289_v3 }
 0x4a7   : > { %v1395_v24 = vmax.f32 %v1350_v18, 0.0 }
 0x4a8   : > { %v1396_v27 = vmax.f32 %v1379_v21, 0.0 }
 0x4a9   : > { %v1403_v30 = vpack.c.bf16 %v1395_v24, %v1393_v23 }
 0x4aa   : > { %v1404_v33 = vpack.c.bf16 %v1396_v27, %v1394_v26 }
 0x4ab   : > { %1420 = vmatpush.bf16.msrb.mxu2 %v1403_v30 }
 0x4ac   : > { %1433 = vmatpush.bf16.msrb.mxu3 %v1404_v33 }
 0x4af   : > { %1421 = vmatpush.bf16.msrb.mxu2 %v1401_v43 }
 0x4b0   : > { %1434 = vmatpush.bf16.msrb.mxu3 %v1402_v47 }
 0x4b3   : > { %1422 = vmatpush.bf16.msrb.mxu2 %v1399_v50 }
 0x4b4   : > { %1435 = vmatpush.bf16.msrb.mxu3 %v1400_v55 }
 0x4b7   : > { %1423 = vmatpush.bf16.msrb.mxu2 %v1397_v56 }
 0x4b8   : > { %1436 = vmatpush.bf16.msrb.mxu3 %v1398_v57 }
 0x4ba   : > { %1655 = vmatmul.msk.bf16.vlgmr.msrb.gmra.mxu2 %vm800_vm3, %v1405_v58 }
 0x4bb   : > { %1656 = vmatmul.msk.bf16.vlgmr.msrb.gmra.mxu3 %vm800_vm3, %v1405_v58 }
 0x53d   : > { %v1425_v60 = vpop.f32.mrf.mxu2 }
 0x53e   : > { %v1438_v62 = vpop.f32.mrf.mxu3  ;;  %v1426_v0 = vadd.f32 %v1425_v60, %v1412_v12 }
 0x53f   : > { %v1439_v63 = vadd.f32 %v1438_v62, %v1412_v12 }
 0x541   : > { %v1444_v1 = vrot.slane %v1439_v63, 7 }
 0x543   : > { %v1446_v2 = vsel %vm1445_vm4, %v1426_v0, %v1444_v1 }
 0x544   : > { %1452 = vst.msk [vmem:[%s436_s26] sm:$0x3] %vm1450_vm5, %v1446_v2 }
 0x545   : > { %v1427_v3 = vpop.f32.mrf.mxu2 }
 0x546   : > { %1791 = shalt.err (!%p1788_p3)
}
 0x547   : > { %1683 = dma.vmem_to_hbm [thread:$0]  (%p1941_p5), %s1467_s25, 32, %s1469_s14, %s1454_s12   ;;  %v1440_v4 = vpop.f32.mrf.mxu3 }
 0x548 PF: > { %p1689_p4 = scmp.ge.s32.totalorder %s1826_s30, 2  ;;  %s1480_s17 = sand.u32 1, %s1814_s27  }
 0x549   : > { %s1481_s26 = scalar_lea.sflag [#allocation4], %s1480_s17 }
 0x54a   : > { %p1686_p7 = pnand %p1689_p4, %p1945_p6 }
 0x54c   : > { %p1687_p8 = pneg %p1686_p7 }
 0x54e   : > { %1809 = dma.done.wait (%p1687_p8), %s1481_s26, 32  }
 0x54f   : > { %1811 = vsyncadd (%p1687_p8), %s1481_s26, 4294967264  ;;  %p25_p9 = scmp.ge.s32.totalorder %s1928_s15, 4   ;;  %s2269_s27 = smov %s1818_s28 }
 0x550   : > { %s2270_s28 = smov %s1822_s29  ;;  %s2271_s29 = smov %s1939_s18 }
 0x551   : > { %s2272_s30 = smov %s1928_s15  ;;  %27 = sbr.rel (!%p25_p9) target bundleno = 6 (0x6), region = 107 }
 0x556   :  { %1487 = vsyncpa [#allocation4], 1 }
 0x557   :  { %1489 = vsyncpa [#allocation4 + $0x1], 1 }

</bundles_post_ra>
